<compile_context>
chip_gen: v5e
topology: v5e:2x2
jax: 0.10.0
libtpu: 0.0.40
codegen_flags: <defaults>
</compile_context>

<pallas_src>
import functools

import jax
import jax.numpy as jnp
import numpy as np
from jax.experimental import pallas as pl
from jax.experimental.pallas import tpu as pltpu

LANE = 128


# ------------------------------- the kernel ---------------------------------

def decoder_cnn_kernel(prelu_ref, x_ref,
                       w4_ref, b4_ref, w3_ref, b3_ref,
                       w2_ref, b2_ref, w1_ref, b1_ref,
                       o_ref, *, t_len):
    m = x_ref.shape[0]                              # rows in this block = bb * t_len

    # Batch-boundary row masks (hoisted once, reused by every layer).
    t_idx = jax.lax.broadcasted_iota(jnp.int32, (m, 1), 0) % t_len
    is_first = t_idx == 0                           # t == 0     -> no left neighbor
    is_last = t_idx == (t_len - 1)                  # t == T - 1 -> no right neighbor

    # PReLU slopes: read the SMEM scalars once.
    a4 = prelu_ref[0]
    a3 = prelu_ref[1]
    a2 = prelu_ref[2]

    def conv_k3(h, w_ref, b_ref):
        # h: (m, Cin) f32. One fused (m, 3*Cin) @ (3*Cin, Cout) bf16 MXU dot, f32 acc.
        h_prev = jnp.where(is_first, 0.0, pltpu.roll(h, 1, 0))      # h[t-1]
        h_next = jnp.where(is_last, 0.0, pltpu.roll(h, m - 1, 0))   # h[t+1]
        h_cat = jnp.concatenate([h_prev, h, h_next], axis=-1)
        y = jnp.dot(h_cat.astype(jnp.bfloat16), w_ref[...],
                    preferred_element_type=jnp.float32)
        return y + b_ref[...]

    def prelu(y, a):
        return jnp.where(y >= 0, y, a * y)

    h = x_ref[...].astype(jnp.float32)
    h = prelu(conv_k3(h, w4_ref, b4_ref), a4)       # dec4 + PReLU
    h = prelu(conv_k3(h, w3_ref, b3_ref), a3)       # dec3 + PReLU
    h = prelu(conv_k3(h, w2_ref, b2_ref), a2)       # dec2 + PReLU
    h = conv_k3(h, w1_ref, b1_ref)                  # dec1 (lane-padded Cout)
    o_ref[...] = h.astype(o_ref.dtype)              # lane-dense store


# -------------------------------- wrapper ------------------------------------

def _pick_batch_block(batch, t_len, row_cap=512):
    # Largest divisor of `batch` whose block stays around row_cap rows and is
    # sublane-aligned; falls back to the full batch (always legal: full dim).
    cap = max(1, row_cap // t_len)
    for d in range(min(batch, cap), 0, -1):
        if batch % d == 0 and (d * t_len) % 8 == 0:
            return d
    return batch


def decoder_cnn_forward(x_ncl, packed, *, n_feats):
    B, n_latent, T = x_ncl.shape
    ws, bs, prelu = packed["w"], packed["b"], packed["prelu"]
    n_pad = ws[-1].shape[-1]                        # lane-padded output width

    # (B, C, T) -> (B*T, C): fold batch into the matmul M dimension.
    x = jnp.transpose(x_ncl, (0, 2, 1)).reshape(B * T, n_latent)

    bb = _pick_batch_block(B, T)
    rows = bb * T

    in_specs = [pl.BlockSpec(memory_space=pltpu.MemorySpace.SMEM),   # PReLU scalars
                pl.BlockSpec((rows, n_latent), lambda i: (i, 0))]    # x row block
    args = [prelu, x]
    for w, b in zip(ws, bs):
        in_specs.append(pl.BlockSpec(w.shape, lambda i: (0, 0)))     # resident weights
        in_specs.append(pl.BlockSpec(b.shape, lambda i: (0, 0)))
        args += [w, b]

    out = pl.pallas_call(
        functools.partial(decoder_cnn_kernel, t_len=T),
        out_shape=jax.ShapeDtypeStruct((B * T, n_pad), jnp.float32),
        grid=(B // bb,),
        in_specs=in_specs,
        out_specs=pl.BlockSpec((rows, n_pad), lambda i: (i, 0)),
        compiler_params=pltpu.CompilerParams(dimension_semantics=("parallel",)),
    )(*args)

    # Strip lane padding; (B, T, n_feats) == PyTorch `output.transpose(1, 2)`.
    return out[:, :n_feats].reshape(B, T, n_feats)


# --------------------------- deterministic params ----------------------------

def init_params(key, n_feats, n_latent):
    """PyTorch-equivalent params: Xavier-normal Conv1d weights, default bias, PReLU(0.25)."""
    h1, h2, h3 = n_feats // 2, n_feats // 4, n_feats // 8
    dims = [(n_latent, h3), (h3, h2), (h2, h1), (h1, n_feats)]       # dec4..dec1
    w_stacks, biases = [], []
    for cin, cout in dims:
        key, kw, kb = jax.random.split(key, 3)
        fan_in, fan_out = cin * 3, cout * 3
        std = (2.0 / (fan_in + fan_out)) ** 0.5                      # Xavier normal
        w_torch = jax.random.normal(kw, (cout, cin, 3), jnp.float32) * std
        bound = 1.0 / np.sqrt(fan_in)                                # Conv1d default bias init
        b = jax.random.uniform(kb, (cout,), jnp.float32, -bound, bound)
        w_stacks.append(jnp.transpose(w_torch, (2, 1, 0)))           # (3, cin, cout); [k] = W[:,:,k].T
        biases.append(b)
    prelu = jnp.full((3,), 0.25, jnp.float32)                        # nn.PReLU() default
    return {"prelu": prelu, "w_stacks": w_stacks, "biases": biases}


def pack_params(params):
    """Kernel-ready params: taps fused to (3*Cin, Cout) bf16; last layer lane-padded to 128."""
    ws, bs = [], []
    n_layers = len(params["w_stacks"])
    for li, (w_stack, b) in enumerate(zip(params["w_stacks"], params["biases"])):
        cout = w_stack.shape[-1]
        w_cat = w_stack.reshape(-1, cout)                            # (3*cin, cout)
        b2 = b.reshape(1, cout)
        if li == n_layers - 1:                                       # lane-dense final store
            n_pad = -(-cout // LANE) * LANE
            if n_pad != cout:
                w_cat = jnp.pad(w_cat, ((0, 0), (0, n_pad - cout)))
                b2 = jnp.pad(b2, ((0, 0), (0, n_pad - cout)))
        ws.append(w_cat.astype(jnp.bfloat16))
        bs.append(b2.astype(jnp.float32))
    return {"prelu": params["prelu"], "w": ws, "b": bs}


# ---------------------------- plain-JAX reference ----------------------------

def reference_forward(x_ncl, params):
    # Conv1d(k=3, pad=1) stacks. Matmul operands cast to bf16 (f32 accumulation)
    # to mirror the kernel's MXU precision; bias add and PReLU stay in f32.
    h = jnp.transpose(x_ncl, (0, 2, 1)).astype(jnp.float32)          # (B, T, Cin)

    def conv(h, w_stack, bias):
        T = h.shape[1]
        hp = jnp.pad(h, ((0, 0), (1, 1), (0, 0)))
        h_cat = jnp.concatenate([hp[:, k:k + T, :] for k in range(3)], axis=-1)
        w_cat = w_stack.reshape(-1, w_stack.shape[-1])
        y = jnp.einsum("btk,kd->btd", h_cat.astype(jnp.bfloat16),
                       w_cat.astype(jnp.bfloat16),
                       preferred_element_type=jnp.float32)
        return y + bias[None, None, :]

    ws, bs, a = params["w_stacks"], params["biases"], params["prelu"]
    for i in range(3):
        h = conv(h, ws[i], bs[i])
        h = jnp.where(h >= 0, h, a[i] * h)
    return conv(h, ws[3], bs[3])                                     # (B, T, n_feats)


# ----------------------------------- main ------------------------------------

if __name__ == "__main__":
    B, n_latent, n_feats, T = 2, 8, 32, 16   # n_times is unused by forward
    key = jax.random.PRNGKey(0)
    key, kx = jax.random.split(key)
    x = jax.random.normal(kx, (B, n_latent, T), jnp.float32)         # PyTorch NCL layout
    params = init_params(key, n_feats, n_latent)
    packed = pack_params(params)

    out = decoder_cnn_forward(x, packed, n_feats=n_feats)
    out = jax.block_until_ready(out)

    ref = reference_forward(x, params)
    np.testing.assert_allclose(np.asarray(out), np.asarray(ref), rtol=1e-4, atol=1e-4)
    assert out.shape == (B, T, n_feats)
    print("KERNEL_OK")
</pallas_src>

<mosaic_0001>
module attributes {stable_mosaic.version = 11 : i64} {
  func.func @decoder_cnn_kernel(%arg0: i32, %arg1: memref<3xf32, #tpu.memory_space<smem>>, %arg2: memref<32x8xf32, #tpu.memory_space<vmem>>, %arg3: memref<24x4xbf16, #tpu.memory_space<vmem>>, %arg4: memref<1x4xf32, #tpu.memory_space<vmem>>, %arg5: memref<12x8xbf16, #tpu.memory_space<vmem>>, %arg6: memref<1x8xf32, #tpu.memory_space<vmem>>, %arg7: memref<24x16xbf16, #tpu.memory_space<vmem>>, %arg8: memref<1x16xf32, #tpu.memory_space<vmem>>, %arg9: memref<48x128xbf16, #tpu.memory_space<vmem>>, %arg10: memref<1x128xf32, #tpu.memory_space<vmem>>, %arg11: memref<32x128xf32, #tpu.memory_space<vmem>>) attributes {dimension_semantics = [#tpu.dimension_semantics<parallel>], iteration_bounds = array<i64: 1>, scalar_prefetch = 0 : i64, scratch_operands = 0 : i64, tpu.core_type = #tpu.core_type<tc>, window_params = [{transform_indices = @transform_0, window_bounds = array<i64: 3>}, {transform_indices = @transform_1, window_bounds = array<i64: 32, 8>}, {pipeline_mode = #tpu.pipeline_mode<synchronous>, transform_indices = @transform_2, window_bounds = array<i64: 24, 4>}, {pipeline_mode = #tpu.pipeline_mode<synchronous>, transform_indices = @transform_3, window_bounds = array<i64: 1, 4>}, {pipeline_mode = #tpu.pipeline_mode<synchronous>, transform_indices = @transform_4, window_bounds = array<i64: 12, 8>}, {pipeline_mode = #tpu.pipeline_mode<synchronous>, transform_indices = @transform_5, window_bounds = array<i64: 1, 8>}, {pipeline_mode = #tpu.pipeline_mode<synchronous>, transform_indices = @transform_6, window_bounds = array<i64: 24, 16>}, {pipeline_mode = #tpu.pipeline_mode<synchronous>, transform_indices = @transform_7, window_bounds = array<i64: 1, 16>}, {pipeline_mode = #tpu.pipeline_mode<synchronous>, transform_indices = @transform_8, window_bounds = array<i64: 48, 128>}, {pipeline_mode = #tpu.pipeline_mode<synchronous>, transform_indices = @transform_9, window_bounds = array<i64: 1, 128>}, {transform_indices = @transform_10, window_bounds = array<i64: 32, 128>}]} {
    %0 = tpu.iota {dimensions = array<i32: 0>} : vector<32x1xi32>
    %c16_i32 = arith.constant 16 : i32
    %c0_i32 = arith.constant 0 : i32
    %1 = arith.cmpi eq, %c16_i32, %c0_i32 : i32
    %c1_i32 = arith.constant 1 : i32
    %2 = arith.select %1, %c1_i32, %c16_i32 : i32
    %3 = vector.broadcast %2 : i32 to vector<32x1xi32>
    %4 = arith.remsi %0, %3 : vector<32x1xi32>
    %c0_i32_0 = arith.constant 0 : i32
    %5 = vector.broadcast %c0_i32_0 : i32 to vector<32x1xi32>
    %6 = arith.cmpi ne, %4, %5 : vector<32x1xi32>
    %c0_i32_1 = arith.constant 0 : i32
    %7 = vector.broadcast %c0_i32_1 : i32 to vector<32x1xi32>
    %8 = arith.cmpi slt, %4, %7 : vector<32x1xi32>
    %c0_i32_2 = arith.constant 0 : i32
    %9 = arith.cmpi slt, %2, %c0_i32_2 : i32
    %10 = vector.broadcast %9 : i1 to vector<32x1xi1>
    %11 = vector.broadcast %10 : vector<32x1xi1> to vector<32x1xi1>
    %12 = arith.xori %8, %11 : vector<32x1xi1>
    %13 = arith.andi %12, %6 : vector<32x1xi1>
    %14 = vector.broadcast %2 : i32 to vector<32x1xi32>
    %15 = arith.addi %4, %14 : vector<32x1xi32>
    %16 = arith.select %13, %15, %4 : vector<32x1xi1>, vector<32x1xi32>
    %c0_i32_3 = arith.constant 0 : i32
    %17 = vector.broadcast %c0_i32_3 : i32 to vector<32x1xi32>
    %18 = arith.cmpi eq, %16, %17 : vector<32x1xi32>
    %c15_i32 = arith.constant 15 : i32
    %19 = vector.broadcast %c15_i32 : i32 to vector<32x1xi32>
    %20 = arith.cmpi eq, %16, %19 : vector<32x1xi32>
    %c0 = arith.constant 0 : index
    %21 = memref.load %arg1[%c0] : memref<3xf32, #tpu.memory_space<smem>>
    %c1 = arith.constant 1 : index
    %22 = memref.load %arg1[%c1] : memref<3xf32, #tpu.memory_space<smem>>
    %c2 = arith.constant 2 : index
    %23 = memref.load %arg1[%c2] : memref<3xf32, #tpu.memory_space<smem>>
    %c0_4 = arith.constant 0 : index
    %c0_5 = arith.constant 0 : index
    %24 = vector.load %arg2[%c0_4, %c0_5] : memref<32x8xf32, #tpu.memory_space<vmem>>, vector<32x8xf32>
    %c1_i32_6 = arith.constant 1 : i32
    %25 = tpu.dynamic_rotate %24 by %c1_i32_6 dim 0 : vector<32x8xf32>, i32 -> vector<32x8xf32>
    %cst = arith.constant 0.000000e+00 : f32
    %26 = vector.shape_cast %18 : vector<32x1xi1> to vector<32x1xi1>
    %27 = vector.broadcast %26 : vector<32x1xi1> to vector<32x8xi1>
    %28 = vector.broadcast %cst : f32 to vector<32x8xf32>
    %29 = arith.select %27, %28, %25 : vector<32x8xi1>, vector<32x8xf32>
    %c31_i32 = arith.constant 31 : i32
    %30 = tpu.dynamic_rotate %24 by %c31_i32 dim 0 : vector<32x8xf32>, i32 -> vector<32x8xf32>
    %cst_7 = arith.constant 0.000000e+00 : f32
    %31 = vector.shape_cast %20 : vector<32x1xi1> to vector<32x1xi1>
    %32 = vector.broadcast %31 : vector<32x1xi1> to vector<32x8xi1>
    %33 = vector.broadcast %cst_7 : f32 to vector<32x8xf32>
    %34 = arith.select %32, %33, %30 : vector<32x8xi1>, vector<32x8xf32>
    %35 = tpu.concatenate %29, %24, %34 in 1 : vector<32x8xf32>, vector<32x8xf32>, vector<32x8xf32> -> vector<32x24xf32>
    %36 = arith.truncf %35 : vector<32x24xf32> to vector<32x24xbf16>
    %c0_8 = arith.constant 0 : index
    %c0_9 = arith.constant 0 : index
    %37 = vector.load %arg3[%c0_8, %c0_9] : memref<24x4xbf16, #tpu.memory_space<vmem>>, vector<24x4xbf16>
    %cst_10 = arith.constant dense<0.000000e+00> : vector<32x4xf32>
    %38 = tpu.matmul %36, %37, %cst_10 {dimension_numbers = #tpu.dot_dimension_numbers<[1], [0], [0], [1], [0, 0, 1, 1], [], []>} : vector<32x24xbf16>, vector<24x4xbf16>, vector<32x4xf32> -> vector<32x4xf32>
    %c0_11 = arith.constant 0 : index
    %c0_12 = arith.constant 0 : index
    %39 = vector.load %arg4[%c0_11, %c0_12] : memref<1x4xf32, #tpu.memory_space<vmem>>, vector<1x4xf32>
    %40 = vector.broadcast %39 : vector<1x4xf32> to vector<32x4xf32>
    %41 = arith.addf %38, %40 : vector<32x4xf32>
    %cst_13 = arith.constant 0.000000e+00 : f32
    %42 = vector.broadcast %cst_13 : f32 to vector<32x4xf32>
    %43 = arith.cmpf oge, %41, %42 : vector<32x4xf32>
    %44 = vector.broadcast %21 : f32 to vector<32x4xf32>
    %45 = arith.mulf %44, %41 : vector<32x4xf32>
    %46 = arith.select %43, %41, %45 : vector<32x4xi1>, vector<32x4xf32>
    %c1_i32_14 = arith.constant 1 : i32
    %47 = tpu.dynamic_rotate %46 by %c1_i32_14 dim 0 : vector<32x4xf32>, i32 -> vector<32x4xf32>
    %cst_15 = arith.constant 0.000000e+00 : f32
    %48 = vector.shape_cast %18 : vector<32x1xi1> to vector<32x1xi1>
    %49 = vector.broadcast %48 : vector<32x1xi1> to vector<32x4xi1>
    %50 = vector.broadcast %cst_15 : f32 to vector<32x4xf32>
    %51 = arith.select %49, %50, %47 : vector<32x4xi1>, vector<32x4xf32>
    %c31_i32_16 = arith.constant 31 : i32
    %52 = tpu.dynamic_rotate %46 by %c31_i32_16 dim 0 : vector<32x4xf32>, i32 -> vector<32x4xf32>
    %cst_17 = arith.constant 0.000000e+00 : f32
    %53 = vector.shape_cast %20 : vector<32x1xi1> to vector<32x1xi1>
    %54 = vector.broadcast %53 : vector<32x1xi1> to vector<32x4xi1>
    %55 = vector.broadcast %cst_17 : f32 to vector<32x4xf32>
    %56 = arith.select %54, %55, %52 : vector<32x4xi1>, vector<32x4xf32>
    %57 = tpu.concatenate %51, %46, %56 in 1 : vector<32x4xf32>, vector<32x4xf32>, vector<32x4xf32> -> vector<32x12xf32>
    %58 = arith.truncf %57 : vector<32x12xf32> to vector<32x12xbf16>
    %c0_18 = arith.constant 0 : index
    %c0_19 = arith.constant 0 : index
    %59 = vector.load %arg5[%c0_18, %c0_19] : memref<12x8xbf16, #tpu.memory_space<vmem>>, vector<12x8xbf16>
    %cst_20 = arith.constant dense<0.000000e+00> : vector<32x8xf32>
    %60 = tpu.matmul %58, %59, %cst_20 {dimension_numbers = #tpu.dot_dimension_numbers<[1], [0], [0], [1], [0, 0, 1, 1], [], []>} : vector<32x12xbf16>, vector<12x8xbf16>, vector<32x8xf32> -> vector<32x8xf32>
    %c0_21 = arith.constant 0 : index
    %c0_22 = arith.constant 0 : index
    %61 = vector.load %arg6[%c0_21, %c0_22] : memref<1x8xf32, #tpu.memory_space<vmem>>, vector<1x8xf32>
    %62 = vector.broadcast %61 : vector<1x8xf32> to vector<32x8xf32>
    %63 = arith.addf %60, %62 : vector<32x8xf32>
    %cst_23 = arith.constant 0.000000e+00 : f32
    %64 = vector.broadcast %cst_23 : f32 to vector<32x8xf32>
    %65 = arith.cmpf oge, %63, %64 : vector<32x8xf32>
    %66 = vector.broadcast %22 : f32 to vector<32x8xf32>
    %67 = arith.mulf %66, %63 : vector<32x8xf32>
    %68 = arith.select %65, %63, %67 : vector<32x8xi1>, vector<32x8xf32>
    %c1_i32_24 = arith.constant 1 : i32
    %69 = tpu.dynamic_rotate %68 by %c1_i32_24 dim 0 : vector<32x8xf32>, i32 -> vector<32x8xf32>
    %cst_25 = arith.constant 0.000000e+00 : f32
    %70 = vector.shape_cast %18 : vector<32x1xi1> to vector<32x1xi1>
    %71 = vector.broadcast %70 : vector<32x1xi1> to vector<32x8xi1>
    %72 = vector.broadcast %cst_25 : f32 to vector<32x8xf32>
    %73 = arith.select %71, %72, %69 : vector<32x8xi1>, vector<32x8xf32>
    %c31_i32_26 = arith.constant 31 : i32
    %74 = tpu.dynamic_rotate %68 by %c31_i32_26 dim 0 : vector<32x8xf32>, i32 -> vector<32x8xf32>
    %cst_27 = arith.constant 0.000000e+00 : f32
    %75 = vector.shape_cast %20 : vector<32x1xi1> to vector<32x1xi1>
    %76 = vector.broadcast %75 : vector<32x1xi1> to vector<32x8xi1>
    %77 = vector.broadcast %cst_27 : f32 to vector<32x8xf32>
    %78 = arith.select %76, %77, %74 : vector<32x8xi1>, vector<32x8xf32>
    %79 = tpu.concatenate %73, %68, %78 in 1 : vector<32x8xf32>, vector<32x8xf32>, vector<32x8xf32> -> vector<32x24xf32>
    %80 = arith.truncf %79 : vector<32x24xf32> to vector<32x24xbf16>
    %c0_28 = arith.constant 0 : index
    %c0_29 = arith.constant 0 : index
    %81 = vector.load %arg7[%c0_28, %c0_29] : memref<24x16xbf16, #tpu.memory_space<vmem>>, vector<24x16xbf16>
    %cst_30 = arith.constant dense<0.000000e+00> : vector<32x16xf32>
    %82 = tpu.matmul %80, %81, %cst_30 {dimension_numbers = #tpu.dot_dimension_numbers<[1], [0], [0], [1], [0, 0, 1, 1], [], []>} : vector<32x24xbf16>, vector<24x16xbf16>, vector<32x16xf32> -> vector<32x16xf32>
    %c0_31 = arith.constant 0 : index
    %c0_32 = arith.constant 0 : index
    %83 = vector.load %arg8[%c0_31, %c0_32] : memref<1x16xf32, #tpu.memory_space<vmem>>, vector<1x16xf32>
    %84 = vector.broadcast %83 : vector<1x16xf32> to vector<32x16xf32>
    %85 = arith.addf %82, %84 : vector<32x16xf32>
    %cst_33 = arith.constant 0.000000e+00 : f32
    %86 = vector.broadcast %cst_33 : f32 to vector<32x16xf32>
    %87 = arith.cmpf oge, %85, %86 : vector<32x16xf32>
    %88 = vector.broadcast %23 : f32 to vector<32x16xf32>
    %89 = arith.mulf %88, %85 : vector<32x16xf32>
    %90 = arith.select %87, %85, %89 : vector<32x16xi1>, vector<32x16xf32>
    %c1_i32_34 = arith.constant 1 : i32
    %91 = tpu.dynamic_rotate %90 by %c1_i32_34 dim 0 : vector<32x16xf32>, i32 -> vector<32x16xf32>
    %cst_35 = arith.constant 0.000000e+00 : f32
    %92 = vector.shape_cast %18 : vector<32x1xi1> to vector<32x1xi1>
    %93 = vector.broadcast %92 : vector<32x1xi1> to vector<32x16xi1>
    %94 = vector.broadcast %cst_35 : f32 to vector<32x16xf32>
    %95 = arith.select %93, %94, %91 : vector<32x16xi1>, vector<32x16xf32>
    %c31_i32_36 = arith.constant 31 : i32
    %96 = tpu.dynamic_rotate %90 by %c31_i32_36 dim 0 : vector<32x16xf32>, i32 -> vector<32x16xf32>
    %cst_37 = arith.constant 0.000000e+00 : f32
    %97 = vector.shape_cast %20 : vector<32x1xi1> to vector<32x1xi1>
    %98 = vector.broadcast %97 : vector<32x1xi1> to vector<32x16xi1>
    %99 = vector.broadcast %cst_37 : f32 to vector<32x16xf32>
    %100 = arith.select %98, %99, %96 : vector<32x16xi1>, vector<32x16xf32>
    %101 = tpu.concatenate %95, %90, %100 in 1 : vector<32x16xf32>, vector<32x16xf32>, vector<32x16xf32> -> vector<32x48xf32>
    %102 = arith.truncf %101 : vector<32x48xf32> to vector<32x48xbf16>
    %c0_38 = arith.constant 0 : index
    %c0_39 = arith.constant 0 : index
    %103 = vector.load %arg9[%c0_38, %c0_39] : memref<48x128xbf16, #tpu.memory_space<vmem>>, vector<48x128xbf16>
    %cst_40 = arith.constant dense<0.000000e+00> : vector<32x128xf32>
    %104 = tpu.matmul %102, %103, %cst_40 {dimension_numbers = #tpu.dot_dimension_numbers<[1], [0], [0], [1], [0, 0, 1, 1], [], []>} : vector<32x48xbf16>, vector<48x128xbf16>, vector<32x128xf32> -> vector<32x128xf32>
    %c0_41 = arith.constant 0 : index
    %c0_42 = arith.constant 0 : index
    %105 = vector.load %arg10[%c0_41, %c0_42] : memref<1x128xf32, #tpu.memory_space<vmem>>, vector<1x128xf32>
    %106 = vector.broadcast %105 : vector<1x128xf32> to vector<32x128xf32>
    %107 = arith.addf %104, %106 : vector<32x128xf32>
    %c0_43 = arith.constant 0 : index
    %c0_44 = arith.constant 0 : index
    %108 = vector.load %arg11[%c0_43, %c0_44] : memref<32x128xf32, #tpu.memory_space<vmem>>, vector<32x128xf32>
    tpu.vector_store %arg11[%c0_43, %c0_44], %107 {strides = array<i32>} : memref<32x128xf32, #tpu.memory_space<vmem>>, vector<32x128xf32>,
    return
  }
  func.func @transform_0(%arg0: i32) -> i32 {
    %c0_i32 = arith.constant 0 : i32
    %c0_i32_0 = arith.constant 0 : i32
    return %c0_i32 : i32
  }
  func.func @transform_1(%arg0: i32) -> (i32, i32) {
    %c0_i32 = arith.constant 0 : i32
    %c0_i32_0 = arith.constant 0 : i32
    return %arg0, %c0_i32 : i32, i32
  }
  func.func @transform_2(%arg0: i32) -> (i32, i32) {
    %c0_i32 = arith.constant 0 : i32
    %c0_i32_0 = arith.constant 0 : i32
    %c0_i32_1 = arith.constant 0 : i32
    return %c0_i32, %c0_i32_0 : i32, i32
  }
  func.func @transform_3(%arg0: i32) -> (i32, i32) {
    %c0_i32 = arith.constant 0 : i32
    %c0_i32_0 = arith.constant 0 : i32
    %c0_i32_1 = arith.constant 0 : i32
    return %c0_i32, %c0_i32_0 : i32, i32
  }
  func.func @transform_4(%arg0: i32) -> (i32, i32) {
    %c0_i32 = arith.constant 0 : i32
    %c0_i32_0 = arith.constant 0 : i32
    %c0_i32_1 = arith.constant 0 : i32
    return %c0_i32, %c0_i32_0 : i32, i32
  }
  func.func @transform_5(%arg0: i32) -> (i32, i32) {
    %c0_i32 = arith.constant 0 : i32
    %c0_i32_0 = arith.constant 0 : i32
    %c0_i32_1 = arith.constant 0 : i32
    return %c0_i32, %c0_i32_0 : i32, i32
  }
  func.func @transform_6(%arg0: i32) -> (i32, i32) {
    %c0_i32 = arith.constant 0 : i32
    %c0_i32_0 = arith.constant 0 : i32
    %c0_i32_1 = arith.constant 0 : i32
    return %c0_i32, %c0_i32_0 : i32, i32
  }
  func.func @transform_7(%arg0: i32) -> (i32, i32) {
    %c0_i32 = arith.constant 0 : i32
    %c0_i32_0 = arith.constant 0 : i32
    %c0_i32_1 = arith.constant 0 : i32
    return %c0_i32, %c0_i32_0 : i32, i32
  }
  func.func @transform_8(%arg0: i32) -> (i32, i32) {
    %c0_i32 = arith.constant 0 : i32
    %c0_i32_0 = arith.constant 0 : i32
    %c0_i32_1 = arith.constant 0 : i32
    return %c0_i32, %c0_i32_0 : i32, i32
  }
  func.func @transform_9(%arg0: i32) -> (i32, i32) {
    %c0_i32 = arith.constant 0 : i32
    %c0_i32_0 = arith.constant 0 : i32
    %c0_i32_1 = arith.constant 0 : i32
    return %c0_i32, %c0_i32_0 : i32, i32
  }
  func.func @transform_10(%arg0: i32) -> (i32, i32) {
    %c0_i32 = arith.constant 0 : i32
    %c0_i32_0 = arith.constant 0 : i32
    return %arg0, %c0_i32 : i32, i32
  }
}

</mosaic_0001>

<bundles_post_ra>
// kernel: tpu_custom_call.1
= control target key start
LH: loop header
LB: loop body
LE: loop exit
PB: predicated region body
PF: predicated region fallthrough
CT: control target
= control target key end

     0   :  { %15 = vsyncpa [#allocation4], 0  ;;  %s1112_s0 = inlined_call_operand.vmem [shape: f32[3], index: 0, kind: input, shape index: {}]   ;;  %s1113_s1 = inlined_call_operand.vmem [shape: f32[32,8], index: 1, kind: input, shape index: {}]   ;;  %s1114_s2 = inlined_call_operand.vmem [shape: bf16[24,4], index: 2, kind: input, shape index: {}]   ;;  %s1115_s3 = inlined_call_operand.vmem [shape: f32[1,4], index: 3, kind: input, shape index: {}]   ;;  %s1116_s4 = inlined_call_operand.vmem [shape: bf16[12,8], index: 4, kind: input, shape index: {}]   ;;  %s1117_s5 = inlined_call_operand.vmem [shape: f32[1,8], index: 5, kind: input, shape index: {}]   ;;  %s1118_s6 = inlined_call_operand.vmem [shape: bf16[24,16], index: 6, kind: input, shape index: {}]   ;;  %s1119_s7 = inlined_call_operand.vmem [shape: f32[1,16], index: 7, kind: input, shape index: {}]   ;;  %s1120_s8 = inlined_call_operand.vmem [shape: bf16[48,128], index: 8, kind: input, shape index: {}]   ;;  %s1121_s9 = inlined_call_operand.vmem [shape: f32[1,128], index: 9, kind: input, shape index: {}]   ;;  %s1122_s10 = inlined_call_operand.hbm [shape: f32[32,128], index: 10, kind: output, shape index: {}]  }
   0x1   :  { %16 = vsyncpa [#allocation3], 0  ;;  %s22_s15 = sshll.u32 %s1112_s0, 4  ;;  %s822_s16 = smov [#allocation2]   ;;  %s23_s15 = int_to_ptr.vmem [resolvable:$true] %s22_s15 }
   0x2   :  { %25 = dma.vmem_to_smem %s23_s15, 16, %s822_s16, [#allocation4]  }
   0x3   :  { %818 = dma.done.wait [#allocation4], 16  }
   0x4   :  { %819 = vsyncadd [#allocation4], 4294967280 }
   0x5   :  { %48 = sfence }
   0x6   :  { %v114_v0 = vld [vmem:[%s1113_s1] sm:$0xff]  ;;  %v115_v1 = vld [vmem:[%s1113_s1 + $0x8] sm:$0xff]  ;;  %v50_v2 = vlaneseq  ;;  %v116_v3 = vld [vmem:[%s1113_s1 + $0x10] sm:$0xff]  ;;  %s823_s24 = smov 8   ;;  %vm227_vm4 = vcmask 1043456   ;;  %vm192_vm7 = vcmask 64512  }
   0x7   :  { %v698_v4 = vpack.i.bf16 %v115_v1, %v114_v0  ;;  %v117_v5 = vld [vmem:[%s1113_s1 + $0x18] sm:$0xff]  ;;  %v140_v6 = vrot.slane %v115_v1, 1  ;;  %v141_v8 = vrot.slane %v116_v3, 1  ;;  %v139_v9 = vrot.slane %v114_v0, 1  ;;  %s824_s1 = smov 16   ;;  %v685_v35 = vld [vmem:[%s1114_s2] sm:$0xff] }
   0x8   :  { %v899_v7 = vshrl.u32 %v50_v2, 7  ;;  %v142_v10 = vrot.slane %v117_v5, 1  ;;  %v708_v11 = vpack.i.bf16 %v117_v5, %v116_v3  ;;  %v119_v26 = vrot.slane %v115_v1, 7  ;;  %v206_v31 = vld [vmem:[%s1114_s2 + $0x8] sm:$0xf]  ;;  %s111_s2 = sld [smem:[#allocation2]] }
   0x9   :  { %699 = vrot.lane.b32.xlu0 %v698_v4, %s823_s24  ;;  %v118_v27 = vrot.slane %v114_v0, 7  ;;  %v121_v28 = vrot.slane %v117_v5, 7  ;;  %v216_v32 = vunpack.c.l.b16 %v206_v31  ;;  %v120_v39 = vrot.slane %v116_v3, 7  ;;  %v778_v4 = vld [vmem:[%s1115_s3] ss:$0 sm:$0xff]  ;;  %s825_s11 = smov 4  }
   0xa   :  { %v52_v12 = vadd.s32 8, %v899_v7  ;;  %vm143_vm0 = vcmp.lt.s32.totalorder %v899_v7, 7  ;;  %v54_v13 = vadd.s32 24, %v899_v7  ;;  %709 = vrot.lane.b32.xlu1 %v708_v11, %s823_s24  ;;  %vm122_vm3 = vcmp.lt.s32.totalorder %v899_v7, 1  ;;  %s827_s28 = smov [#allocation5]  }
   0xb   :  { %v145_v15 = vsel %vm143_vm0, %v140_v6, %v141_v8  ;;  %v147_v17 = vsel %vm143_vm0, %v142_v10, %v139_v9  ;;  %v146_v18 = vsel %vm143_vm0, %v139_v9, %v140_v6  ;;  %v144_v19 = vsel %vm143_vm0, %v141_v8, %v142_v10 }
   0xc   :  { %v66_v14 = vand.u32 15, %v52_v12  ;;  %v80_v16 = vand.u32 15, %v54_v13  ;;  %v125_v29 = vsel %vm122_vm3, %v118_v27, %v119_v26  ;;  %v126_v30 = vsel %vm122_vm3, %v121_v28, %v118_v27 }
   0xd   :  { %v218_v33 = vpack.c.b16 %v216_v32, %v216_v32  ;;  %v53_v36 = vadd.s32 16, %v899_v7  ;;  %v59_v40 = vand.u32 15, %v899_v7  ;;  %v124_v43 = vsel %vm122_vm3, %v119_v26, %v120_v39  ;;  %v688_v7 = vld [vmem:[%s1120_s8] sm:$0xff] }
   0xe   :  { %vm914_vm1 = vcmp.eq.s32.totalorder %v66_v14, 15  ;;  %vm918_vm2 = vcmp.eq.s32.totalorder %v80_v16, 15  ;;  %v123_v49 = vsel %vm122_vm3, %v120_v39, %v121_v28  ;;  %vm197_vm8 = vcmask 130048  }
   0xf   :  { %v157_v22 = vsel %vm914_vm1, 0.0, %v145_v15  ;;  %v159_v23 = vsel %vm918_vm2, 0.0, %v147_v17  ;;  %v229_v34 = vsel %vm227_vm4, %v218_v33, 0  ;;  %v73_v38 = vand.u32 15, %v53_v36 }
  0x10   :  { %v703_v24 = vpack.i.bf16 %v157_v22, %v146_v18  ;;  %v713_v25 = vpack.i.bf16 %v159_v23, %v144_v19  ;;  %237 = vmatpush.bf16.msra.mxu0 %v229_v34  ;;  %vm948_vm6 = vcmp.eq.s32.totalorder %v59_v40, 0  ;;  %vm220_vm9 = vcmask 195584  }
  0x11   :  { %vm942_vm5 = vcmp.eq.s32.totalorder %v73_v38, 0  ;;  %v135_v51 = vsel %vm948_vm6, 0.0, %v126_v30  ;;  %v254_v8 = vstv %s111_s2  ;;  %vm348_vm14 = vcmask 1045504   ;;  %s636_s2 = sshll.u32 %s827_s28, 4  ;;  %s637_s2 = int_to_ptr.vmem [resolvable:$true] %s636_s2 }
  0x12   :  { %704 = vrot.lane.b32.xlu0 %v703_v24, %s824_s1  ;;  %714 = vrot.lane.b32.xlu1 %v713_v25, %s824_s1  ;;  %v137_v50 = vsel %vm942_vm5, 0.0, %v124_v43  ;;  %vm319_vm15 = vcmask 31744  }
  0x14   :  { %238 = vmatpush.bf16.msra.mxu0 %v685_v35 }
  0x7b   :  { %v700_v37 = vpop.permute.xlu0 %699 }
  0x7c   :  { %v710_v41 = vpop.permute.xlu1 %709  ;;  %v702_v47 = vunpack.i.h.bf16 %v700_v37  ;;  %v701_v48 = vunpack.i.l.bf16 %v700_v37 }
  0x7d   :  { %v712_v45 = vunpack.i.h.bf16 %v710_v41  ;;  %v711_v46 = vunpack.i.l.bf16 %v710_v41 }
  0x7e   :  { %v193_v58 = vsel %vm192_vm7, %v135_v51, %v701_v48  ;;  %v194_v59 = vsel %vm192_vm7, %v125_v29, %v702_v47 }
  0x7f   :  { %v195_v55 = vsel %vm192_vm7, %v137_v50, %v711_v46  ;;  %v196_v56 = vsel %vm192_vm7, %v123_v49, %v712_v45  ;;  %v661_v49 = vld [vmem:[%s1116_s4] sm:$0xf]  ;;  %v686_v50 = vld [vmem:[%s1116_s4] sm:$0x30]  ;;  %s651_s4 = sld [smem:[#allocation2 + $0x1]] }
  0x80   :  { %v662_v51 = vor.u32 %v686_v50, %v661_v49 }
  0x84   :  { %v705_v52 = vpop.permute.xlu0 %704  ;;  %v715_v57 = vpop.permute.xlu1 %714 }
  0x85   :  { %v707_v53 = vunpack.i.h.bf16 %v705_v52  ;;  %v706_v54 = vunpack.i.l.bf16 %v705_v52  ;;  %v717_v60 = vunpack.i.h.bf16 %v715_v57  ;;  %v716_v61 = vunpack.i.l.bf16 %v715_v57 }
  0x86   :  { %v350_v52 = vsel %vm348_vm14, %v662_v51, 0 }
  0x87   :  { %v198_v62 = vsel %vm197_vm8, %v193_v58, %v706_v54  ;;  %v199_v63 = vsel %vm197_vm8, %v194_v59, %v707_v53  ;;  %v200_v1 = vsel %vm197_vm8, %v195_v55, %v716_v61  ;;  %v201_v2 = vsel %vm197_vm8, %v196_v56, %v717_v60  ;;  %359 = vmatpush.bf16.msra.mxu1 %v350_v52 }
  0x88   :  { %v202_v0 = vpack.c.bf16 %v199_v63, %v198_v62  ;;  %v203_v3 = vpack.c.bf16 %v201_v2, %v200_v1 }
  0x8a   :  { %657 = vmatmul.msk.bf16.vlgmr.msra.gmra.mxu0 %vm220_vm9, %v202_v0 }
  0x9a   :  { %658 = vmatmul.msk.bf16.gmra.mxu0 %vm220_vm9, %v203_v3 }
 0x107   :  { %v240_v5 = vpop.f32.mrf.mxu0 }
 0x108   :  { %v241_v6 = vadd.f32 %v778_v4, %v240_v5 }
 0x10a   :  { %v255_v9 = vmul.f32 %v254_v8, %v241_v6  ;;  %vm250_vm10 = vcmp.ge.f32.partialorder %v241_v6, 0.0 }
 0x10c   :  { %v259_v13 = vsel %vm250_vm10, %v241_v6, %v255_v9  ;;  %vm341_vm10 = vcmask 97280  }
 0x10d   :  { %v263_v17 = vrot.slane %v259_v13, 7  ;;  %v275_v28 = vrot.slane %v259_v13, 1 }
 0x10f   :  { %v242_v10 = vpop.f32.mrf.mxu0 }
 0x110   :  { %v243_v11 = vadd.f32 %v778_v4, %v242_v10 }
 0x112   :  { %vm251_vm11 = vcmp.ge.f32.partialorder %v243_v11, 0.0  ;;  %v256_v12 = vmul.f32 %v254_v8, %v243_v11 }
 0x114   :  { %v260_v14 = vsel %vm251_vm11, %v243_v11, %v256_v12 }
 0x115   :  { %v264_v15 = vrot.slane %v260_v14, 7  ;;  %v718_v16 = vpack.i.bf16 %v260_v14, %v259_v13  ;;  %v276_v25 = vrot.slane %v260_v14, 1  ;;  %v779_v14 = vld [vmem:[%s1117_s5] ss:$0 sm:$0xff] }
 0x117   :  { %v245_v18 = vpop.f32.mrf.mxu0  ;;  %719 = vrot.lane.b32.xlu2 %v718_v16, %s825_s11  ;;  %v269_v19 = vsel %vm122_vm3, %v263_v17, %v264_v15  ;;  %v281_v33 = vsel %vm143_vm0, %v275_v28, %v276_v25 }
 0x118   :  { %v246_v22 = vadd.f32 %v778_v4, %v245_v18 }
 0x11a   :  { %vm252_vm12 = vcmp.ge.f32.partialorder %v246_v22, 0.0  ;;  %v257_v23 = vmul.f32 %v254_v8, %v246_v22 }
 0x11c   :  { %v261_v24 = vsel %vm252_vm12, %v246_v22, %v257_v23 }
 0x11d   :  { %v265_v26 = vrot.slane %v261_v24, 7  ;;  %v277_v27 = vrot.slane %v261_v24, 1 }
 0x11f   :  { %v247_v29 = vpop.f32.mrf.mxu0  ;;  %v280_v30 = vsel %vm143_vm0, %v276_v25, %v277_v27  ;;  %v268_v31 = vsel %vm122_vm3, %v264_v15, %v265_v26 }
 0x120   :  { %v248_v32 = vadd.f32 %v778_v4, %v247_v29  ;;  %v284_v34 = vsel %vm914_vm1, 0.0, %v280_v30  ;;  %v273_v5 = vsel %vm942_vm5, 0.0, %v268_v31 }
 0x121   :  { %v723_v35 = vpack.i.bf16 %v284_v34, %v281_v33 }
 0x122   :  { %vm253_vm13 = vcmp.ge.f32.partialorder %v248_v32, 0.0  ;;  %v258_v36 = vmul.f32 %v254_v8, %v248_v32 }
 0x123   :  { %724 = vrot.lane.b32.xlu2 %v723_v35, %s823_s24 }
 0x124   :  { %v262_v37 = vsel %vm253_vm13, %v248_v32, %v258_v36 }
 0x125   :  { %v266_v38 = vrot.slane %v262_v37, 7  ;;  %v278_v39 = vrot.slane %v262_v37, 1  ;;  %v728_v40 = vpack.i.bf16 %v262_v37, %v261_v24 }
 0x127   :  { %729 = vrot.lane.b32.xlu0 %v728_v40, %s825_s11  ;;  %v279_v41 = vsel %vm143_vm0, %v277_v27, %v278_v39  ;;  %v282_v43 = vsel %vm143_vm0, %v278_v39, %v275_v28  ;;  %v270_v45 = vsel %vm122_vm3, %v266_v38, %v263_v17  ;;  %v267_v46 = vsel %vm122_vm3, %v265_v26, %v266_v38  ;;  %s638_s11 = sshll.u32 %s1122_s10, 4  ;;  %s639_s11 = int_to_ptr.hbm [resolvable:$true] %s638_s11 }
 0x128   :  { %v286_v47 = vsel %vm918_vm2, 0.0, %v282_v43  ;;  %v271_v57 = vsel %vm948_vm6, 0.0, %v270_v45  ;;  %v375_v17 = vstv %s651_s4 }
 0x129   :  { %v733_v48 = vpack.i.bf16 %v286_v47, %v279_v41 }
 0x12b   :  { %734 = vrot.lane.b32.xlu1 %v733_v48, %s823_s24 }
 0x171   :  { %v720_v53 = vpop.permute.xlu2 %719 }
 0x172   :  { %v722_v54 = vunpack.i.h.bf16 %v720_v53  ;;  %v721_v55 = vunpack.i.l.bf16 %v720_v53 }
 0x174   :  { %v320_v60 = vsel %vm319_vm15, %v271_v57, %v721_v55  ;;  %v321_v61 = vsel %vm319_vm15, %v269_v19, %v722_v54 }
 0x17d   :  { %v725_v56 = vpop.permute.xlu2 %724 }
 0x17e   :  { %v727_v58 = vunpack.i.h.bf16 %v725_v56  ;;  %v726_v59 = vunpack.i.l.bf16 %v725_v56 }
 0x180   :  { %v324_v62 = vsel %vm192_vm7, %v320_v60, %v726_v59  ;;  %v325_v63 = vsel %vm192_vm7, %v321_v61, %v727_v58  ;;  %v452_v58 = vld [vmem:[%s1118_s6 + $0x8] sm:$0xf] }
 0x181   :  { %v328_v0 = vpack.c.bf16 %v325_v63, %v324_v62  ;;  %v462_v59 = vunpack.c.l.b16 %v452_v58  ;;  %v687_v62 = vld [vmem:[%s1118_s6] sm:$0xff]  ;;  %s652_s6 = sld [smem:[#allocation2 + $0x2]] }
 0x183   :  { %663 = vmatmul.msk.bf16.vlgmr.msra.gmra.mxu1 %vm341_vm10, %v328_v0  ;;  %v464_v60 = vpack.c.b16 %v462_v59, %v462_v59 }
 0x185   :  { %v473_v61 = vsel %vm227_vm4, %v464_v60, 0 }
 0x186   :  { %481 = vmatpush.bf16.msra.mxu2 %v473_v61 }
 0x18a   :  { %482 = vmatpush.bf16.msra.mxu2 %v687_v62 }
 0x199   :  { %v730_v1 = vpop.permute.xlu0 %729 }
 0x19a   :  { %v732_v2 = vunpack.i.h.bf16 %v730_v1  ;;  %v731_v3 = vunpack.i.l.bf16 %v730_v1 }
 0x19c   :  { %v322_v9 = vsel %vm319_vm15, %v273_v5, %v731_v3  ;;  %v323_v10 = vsel %vm319_vm15, %v267_v46, %v732_v2 }
 0x19d   :  { %v735_v4 = vpop.permute.xlu1 %734 }
 0x19e   :  { %v737_v6 = vunpack.i.h.bf16 %v735_v4  ;;  %v736_v8 = vunpack.i.l.bf16 %v735_v4 }
 0x1a0   :  { %v326_v11 = vsel %vm192_vm7, %v322_v9, %v736_v8  ;;  %v327_v12 = vsel %vm192_vm7, %v323_v10, %v737_v6 }
 0x1a1   :  { %v329_v13 = vpack.c.bf16 %v327_v12, %v326_v11 }
 0x1a3   :  { %664 = vmatmul.msk.bf16.gmra.mxu1 %vm341_vm10, %v329_v13 }
 0x200   :  { %v361_v15 = vpop.f32.mrf.mxu1 }
 0x201   :  { %v362_v16 = vadd.f32 %v779_v14, %v361_v15 }
 0x203   :  { %v376_v18 = vmul.f32 %v375_v17, %v362_v16  ;;  %vm371_vm11 = vcmp.ge.f32.partialorder %v362_v16, 0.0 }
 0x205   :  { %v380_v23 = vsel %vm371_vm11, %v362_v16, %v376_v18 }
 0x206   :  { %v384_v26 = vrot.slane %v380_v23, 7  ;;  %v396_v37 = vrot.slane %v380_v23, 1 }
 0x208   :  { %v363_v19 = vpop.f32.mrf.mxu1 }
 0x209   :  { %v364_v22 = vadd.f32 %v779_v14, %v363_v19 }
 0x20b   :  { %vm372_vm12 = vcmp.ge.f32.partialorder %v364_v22, 0.0  ;;  %v377_v24 = vmul.f32 %v375_v17, %v364_v22 }
 0x20d   :  { %v381_v25 = vsel %vm372_vm12, %v364_v22, %v377_v24 }
 0x20e   :  { %v385_v27 = vrot.slane %v381_v25, 7  ;;  %v738_v28 = vpack.i.bf16 %v381_v25, %v380_v23  ;;  %v397_v33 = vrot.slane %v381_v25, 1 }
 0x210   :  { %739 = vrot.lane.b32.xlu2 %v738_v28, %s823_s24  ;;  %v390_v29 = vsel %vm122_vm3, %v384_v26, %v385_v27  ;;  %v402_v43 = vsel %vm143_vm0, %v396_v37, %v397_v33 }
 0x220   :  { %v366_v30 = vpop.f32.mrf.mxu1 }
 0x221   :  { %v367_v31 = vadd.f32 %v779_v14, %v366_v30 }
 0x223   :  { %vm373_vm13 = vcmp.ge.f32.partialorder %v367_v31, 0.0  ;;  %v378_v32 = vmul.f32 %v375_v17, %v367_v31 }
 0x225   :  { %v382_v34 = vsel %vm373_vm13, %v367_v31, %v378_v32 }
 0x226   :  { %v386_v35 = vrot.slane %v382_v34, 7  ;;  %v398_v36 = vrot.slane %v382_v34, 1 }
 0x228   :  { %v368_v38 = vpop.f32.mrf.mxu1  ;;  %v401_v39 = vsel %vm143_vm0, %v397_v33, %v398_v36  ;;  %v389_v40 = vsel %vm122_vm3, %v385_v27, %v386_v35 }
 0x229   :  { %v369_v41 = vadd.f32 %v779_v14, %v368_v38  ;;  %v405_v45 = vsel %vm914_vm1, 0.0, %v401_v39  ;;  %v394_v18 = vsel %vm942_vm5, 0.0, %v389_v40 }
 0x22a   :  { %v743_v46 = vpack.i.bf16 %v405_v45, %v402_v43 }
 0x22b   :  { %vm374_vm14 = vcmp.ge.f32.partialorder %v369_v41, 0.0  ;;  %v379_v47 = vmul.f32 %v375_v17, %v369_v41 }
 0x22c   :  { %744 = vrot.lane.b32.xlu0 %v743_v46, %s824_s1 }
 0x22d   :  { %v383_v48 = vsel %vm374_vm14, %v369_v41, %v379_v47 }
 0x22e   :  { %v387_v49 = vrot.slane %v383_v48, 7  ;;  %v399_v50 = vrot.slane %v383_v48, 1  ;;  %v748_v51 = vpack.i.bf16 %v383_v48, %v382_v34 }
 0x230   :  { %749 = vrot.lane.b32.xlu1 %v748_v51, %s823_s24  ;;  %v400_v52 = vsel %vm143_vm0, %v398_v36, %v399_v50  ;;  %v403_v53 = vsel %vm143_vm0, %v399_v50, %v396_v37  ;;  %v391_v54 = vsel %vm122_vm3, %v387_v49, %v384_v26  ;;  %v388_v55 = vsel %vm122_vm3, %v386_v35, %v387_v49  ;;  %v780_v26 = vld [vmem:[%s1119_s7] ss:$0 sm:$0xff]  ;;  %s826_s7 = smov 32  }
 0x231   :  { %v407_v56 = vsel %vm918_vm2, 0.0, %v403_v53  ;;  %v392_v3 = vsel %vm948_vm6, 0.0, %v391_v54 }
 0x232   :  { %v753_v57 = vpack.i.bf16 %v407_v56, %v400_v52 }
 0x234   :  { %754 = vrot.lane.b32.xlu2 %v753_v57, %s824_s1 }
 0x26a   :  { %v740_v63 = vpop.permute.xlu2 %739 }
 0x26b   :  { %v742_v0 = vunpack.i.h.bf16 %v740_v63  ;;  %v741_v1 = vunpack.i.l.bf16 %v740_v63 }
 0x26d   :  { %v440_v6 = vsel %vm192_vm7, %v392_v3, %v741_v1  ;;  %v441_v8 = vsel %vm192_vm7, %v390_v29, %v742_v0  ;;  %v498_v29 = vstv %s652_s6  ;;  %v690_v3 = vld [vmem:[%s1120_s8 + $0x10] sm:$0xff] }
 0x26e   :  { %614 = vmatpush.bf16.msra.mxu3 %v690_v3 }
 0x28e   :  { %v755_v9 = vpop.permute.xlu2 %754 }
 0x28f   :  { %v757_v16 = vunpack.i.h.bf16 %v755_v9  ;;  %v756_v17 = vunpack.i.l.bf16 %v755_v9 }
 0x29e   :  { %v745_v2 = vpop.permute.xlu0 %744 }
 0x29f   :  { %v747_v4 = vunpack.i.h.bf16 %v745_v2  ;;  %v746_v5 = vunpack.i.l.bf16 %v745_v2 }
 0x2a1   :  { %v444_v10 = vsel %vm197_vm8, %v440_v6, %v746_v5  ;;  %v445_v11 = vsel %vm197_vm8, %v441_v8, %v747_v4  ;;  %v689_v4 = vld [vmem:[%s1120_s8 + $0x8] sm:$0xff] }
 0x2a2   :  { %v750_v12 = vpop.permute.xlu1 %749  ;;  %v448_v13 = vpack.c.bf16 %v445_v11, %v444_v10  ;;  %615 = vmatpush.bf16.msra.mxu3 %v689_v4 }
 0x2a3   :  { %v752_v14 = vunpack.i.h.bf16 %v750_v12  ;;  %v751_v15 = vunpack.i.l.bf16 %v750_v12 }
 0x2a4   :  { %669 = vmatmul.msk.bf16.vlgmr.msra.gmra.mxu2 %vm220_vm9, %v448_v13 }
 0x2a5   :  { %v442_v19 = vsel %vm192_vm7, %v394_v18, %v751_v15  ;;  %v443_v22 = vsel %vm192_vm7, %v388_v55, %v752_v14 }
 0x2a6   :  { %v446_v23 = vsel %vm197_vm8, %v442_v19, %v756_v17  ;;  %v447_v24 = vsel %vm197_vm8, %v443_v22, %v757_v16  ;;  %616 = vmatpush.bf16.msra.mxu3 %v688_v7 }
 0x2a7   :  { %v449_v25 = vpack.c.bf16 %v447_v24, %v446_v23 }
 0x2b4   :  { %670 = vmatmul.msk.bf16.gmra.mxu2 %vm220_vm9, %v449_v25 }
 0x327   :  { %v484_v27 = vpop.f32.mrf.mxu2 }
 0x328   :  { %v485_v28 = vadd.f32 %v780_v26, %v484_v27 }
 0x32a   :  { %v499_v30 = vmul.f32 %v498_v29, %v485_v28  ;;  %vm494_vm4 = vcmp.ge.f32.partialorder %v485_v28, 0.0 }
 0x32c   :  { %v503_v33 = vsel %vm494_vm4, %v485_v28, %v499_v30  ;;  %v781_v30 = vld [vmem:[%s1121_s9] ss:$0 sm:$0xff]  ;;  %s828_s9 = smov 128  }
 0x32d   :  { %v507_v36 = vrot.slane %v503_v33, 7  ;;  %v519_v49 = vrot.slane %v503_v33, 1 }
 0x32f   :  { %v486_v31 = vpop.f32.mrf.mxu2 }
 0x330   :  { %v487_v32 = vadd.f32 %v780_v26, %v486_v31 }
 0x332   :  { %vm495_vm7 = vcmp.ge.f32.partialorder %v487_v32, 0.0  ;;  %v500_v34 = vmul.f32 %v498_v29, %v487_v32 }
 0x334   :  { %v504_v35 = vsel %vm495_vm7, %v487_v32, %v500_v34 }
 0x335   :  { %v508_v37 = vrot.slane %v504_v35, 7  ;;  %v758_v38 = vpack.i.bf16 %v504_v35, %v503_v33  ;;  %v520_v45 = vrot.slane %v504_v35, 1 }
 0x337   :  { %v489_v39 = vpop.f32.mrf.mxu2  ;;  %759 = vrot.lane.b32.xlu0 %v758_v38, %s824_s1  ;;  %v513_v40 = vsel %vm122_vm3, %v507_v36, %v508_v37  ;;  %v525_v54 = vsel %vm143_vm0, %v519_v49, %v520_v45 }
 0x338   :  { %v490_v41 = vadd.f32 %v780_v26, %v489_v39 }
 0x33a   :  { %vm496_vm9 = vcmp.ge.f32.partialorder %v490_v41, 0.0  ;;  %v501_v43 = vmul.f32 %v498_v29, %v490_v41 }
 0x33c   :  { %v505_v46 = vsel %vm496_vm9, %v490_v41, %v501_v43 }
 0x33d   :  { %v509_v47 = vrot.slane %v505_v46, 7  ;;  %v521_v48 = vrot.slane %v505_v46, 1 }
 0x33f   :  { %v491_v50 = vpop.f32.mrf.mxu2  ;;  %v524_v51 = vsel %vm143_vm0, %v520_v45, %v521_v48  ;;  %v512_v52 = vsel %vm122_vm3, %v508_v37, %v509_v47 }
 0x340   :  { %v492_v53 = vadd.f32 %v780_v26, %v491_v50  ;;  %v528_v55 = vsel %vm914_vm1, 0.0, %v524_v51  ;;  %vm602_vm1 = vcmask 392192   ;;  %v517_v44 = vsel %vm942_vm5, 0.0, %v512_v52 }
 0x341   :  { %v763_v56 = vpack.i.bf16 %v528_v55, %v525_v54 }
 0x342   :  { %vm497_vm15 = vcmp.ge.f32.partialorder %v492_v53, 0.0  ;;  %v502_v57 = vmul.f32 %v498_v29, %v492_v53 }
 0x343   :  { %764 = vrot.lane.b32.xlu1 %v763_v56, %s826_s7 }
 0x344   :  { %v506_v58 = vsel %vm497_vm15, %v492_v53, %v502_v57 }
 0x345   :  { %v510_v59 = vrot.slane %v506_v58, 7  ;;  %v522_v60 = vrot.slane %v506_v58, 1  ;;  %v768_v61 = vpack.i.bf16 %v506_v58, %v505_v46 }
 0x347   :  { %769 = vrot.lane.b32.xlu2 %v768_v61, %s824_s1  ;;  %v523_v62 = vsel %vm143_vm0, %v521_v48, %v522_v60  ;;  %v526_v63 = vsel %vm143_vm0, %v522_v60, %v519_v49  ;;  %v511_v20 = vsel %vm122_vm3, %v509_v47, %v510_v59  ;;  %v514_v0 = vsel %vm122_vm3, %v510_v59, %v507_v36 }
 0x348   :  { %v530_v1 = vsel %vm918_vm2, 0.0, %v526_v63  ;;  %vm567_vm0 = vcmask 261120   ;;  %v515_v9 = vsel %vm948_vm6, 0.0, %v514_v0 }
 0x349   :  { %v773_v2 = vpack.i.bf16 %v530_v1, %v523_v62 }
 0x34b   :  { %774 = vrot.lane.b32.xlu0 %v773_v2, %s826_s7 }
 0x3a1   :  { %v770_v14 = vpop.permute.xlu2 %769 }
 0x3a2   :  { %v772_v18 = vunpack.i.h.bf16 %v770_v14  ;;  %v771_v19 = vunpack.i.l.bf16 %v770_v14 }
 0x3a4   :  { %v565_v25 = vsel %vm197_vm8, %v517_v44, %v771_v19  ;;  %v566_v26 = vsel %vm197_vm8, %v511_v20, %v772_v18 }
 0x3a9   :  { %v760_v5 = vpop.permute.xlu0 %759 }
 0x3aa   :  { %v762_v21 = vunpack.i.h.bf16 %v760_v5  ;;  %v761_v6 = vunpack.i.l.bf16 %v760_v5 }
 0x3ac   :  { %v563_v12 = vsel %vm197_vm8, %v515_v9, %v761_v6  ;;  %v564_v13 = vsel %vm197_vm8, %v513_v40, %v762_v21 }
 0x3b5   :  { %v765_v8 = vpop.permute.xlu1 %764 }
 0x3b6   :  { %v767_v10 = vunpack.i.h.bf16 %v765_v8  ;;  %v766_v11 = vunpack.i.l.bf16 %v765_v8 }
 0x3b8   :  { %v568_v15 = vsel %vm567_vm0, %v563_v12, %v766_v11  ;;  %v569_v16 = vsel %vm567_vm0, %v564_v13, %v767_v10 }
 0x3b9   :  { %v572_v17 = vpack.c.bf16 %v569_v16, %v568_v15 }
 0x3bb   :  { %683 = vmatmul.msk.bf16.vlgmr.msra.gmra.mxu3 %vm602_vm1, %v572_v17 }
 0x3bd   :  { %v775_v22 = vpop.permute.xlu0 %774 }
 0x3be   :  { %v777_v23 = vunpack.i.h.bf16 %v775_v22  ;;  %v776_v24 = vunpack.i.l.bf16 %v775_v22 }
 0x3c0   :  { %v570_v27 = vsel %vm567_vm0, %v565_v25, %v776_v24  ;;  %v571_v28 = vsel %vm567_vm0, %v566_v26, %v777_v23 }
 0x3c1   :  { %v573_v29 = vpack.c.bf16 %v571_v28, %v570_v27 }
 0x3cb   :  { %684 = vmatmul.msk.bf16.gmra.mxu3 %vm602_vm1, %v573_v29 }
 0x43e   :  { %v618_v31 = vpop.f32.mrf.mxu3 }
 0x43f   :  { %v619_v32 = vadd.f32 %v781_v30, %v618_v31 }
 0x441   :  { %628 = vst [vmem:[#allocation5] sm:$0xff] %v619_v32 }
 0x446   :  { %v620_v42 = vpop.f32.mrf.mxu3 }
 0x447   :  { %v621_v33 = vadd.f32 %v781_v30, %v620_v42 }
 0x449   :  { %629 = vst [vmem:[#allocation5 + $0x8] sm:$0xff] %v621_v33 }
 0x44e   :  { %v623_v34 = vpop.f32.mrf.mxu3 }
 0x44f   :  { %v624_v35 = vadd.f32 %v781_v30, %v623_v34 }
 0x451   :  { %630 = vst [vmem:[#allocation5 + $0x10] sm:$0xff] %v624_v35 }
 0x456   :  { %v625_v36 = vpop.f32.mrf.mxu3 }
 0x457   :  { %v626_v37 = vadd.f32 %v781_v30, %v625_v36 }
 0x459   :  { %631 = vst [vmem:[#allocation5 + $0x18] sm:$0xff] %v626_v37 }
 0x45a   :  { %644 = dma.vmem_to_hbm [thread:$0]  %s637_s2, 512, %s639_s11, [#allocation3], %s828_s9, %s828_s9, %s823_s24  }
 0x45b   :  { %820 = dma.done.wait [#allocation3], 512  }
 0x45c   :  { %821 = vsyncadd [#allocation3], 4294966784 }
 0x45d   :  { %649 = vsyncpa [#allocation3], 1 }
 0x45e   :  { %650 = vsyncpa [#allocation4], 1 }

</bundles_post_ra>
